<compile_context>
chip_gen: v5e
topology: v5e:2x2
jax: 0.10.0
libtpu: 0.0.40
codegen_flags: <defaults>
</compile_context>

<pallas_src>
import functools

import jax
import jax.numpy as jnp
from jax.experimental import pallas as pl
from jax.experimental.pallas import tpu as pltpu


def masked_ce_kernel(x_ref, t_ref, wt_ref, loss_ref, wsum_ref, acc_nll, acc_w,
                     *, total_rows, inner_steps):
    """One row tile of masked, class-weighted cross entropy.

    x_ref:  [TB, C] logits (any float dtype, upcast to f32 here)
    t_ref:  [TB, 1] int32 targets
    wt_ref: [TB, 1] f32 weight[target] with the row mask already folded in
    loss_ref / wsum_ref: (8, 128) f32 lane-dense partial outputs (one per chunk)
    acc_nll / acc_w:     (TB, 1) f32 VMEM accumulators, resident across the inner axis
    """
    j = pl.program_id(1)
    tile_idx = pl.program_id(0) * inner_steps + j

    @pl.when(j == 0)
    def _init():
        acc_nll[...] = jnp.zeros_like(acc_nll)
        acc_w[...] = jnp.zeros_like(acc_w)
        loss_ref[...] = jnp.zeros_like(loss_ref)
        wsum_ref[...] = jnp.zeros_like(wsum_ref)

    x = x_ref[...].astype(jnp.float32)            # [TB, C]
    tgt = t_ref[...]                              # [TB, 1] int32
    wt = wt_ref[...]                              # [TB, 1] f32
    tb, c = x.shape

    # Rows beyond B (ragged last tile or clamped/padded chunk) must not contribute.
    row = jax.lax.broadcasted_iota(jnp.int32, (tb, 1), 0) + tile_idx * tb
    keep = row < total_rows                       # [TB, 1] bool

    # logits[target] via select-reduce (no f32 one-hot, no extra multiply pass).
    col = jax.lax.broadcasted_iota(jnp.int32, (tb, c), 1)
    x_t = jnp.sum(jnp.where(col == tgt, x, jnp.float32(0.0)),
                  axis=-1, keepdims=True)         # [TB, 1]

    # Numerically stable per-row log-sum-exp.
    m = jnp.max(x, axis=-1, keepdims=True)
    lse = m + jnp.log(jnp.sum(jnp.exp(x - m), axis=-1, keepdims=True))

    # `where` (not multiply) so garbage in padded rows can never become NaN*0.
    acc_nll[...] += jnp.where(keep, (lse - x_t) * wt, jnp.float32(0.0))
    acc_w[...] += jnp.where(keep, wt, jnp.float32(0.0))

    @pl.when(j == inner_steps - 1)
    def _finalize():
        loss_ref[...] = jnp.broadcast_to(jnp.sum(acc_nll[...]), loss_ref.shape)
        wsum_ref[...] = jnp.broadcast_to(jnp.sum(acc_w[...]), wsum_ref.shape)


def masked_cross_entropy_loss(logits, target, mask, weight, reduction="mean",
                              tile_b=None, parallel_chunks=2,
                              target_block_bytes=4 << 20, validate_mask=False):
    """logits: [B, C] float, target: [B] int, mask: [B] bool/int, weight: [C] float."""
    if validate_mask:
        # Host-side check mirroring the module's ValueError.  It forces a device
        # sync and is not jit-compatible, so it is opt-in (perf review).
        if not bool(jnp.any(mask != 0)):
            raise ValueError("Mask in MaskedCrossEntropyLoss is all zeros.")

    B, C = logits.shape
    itemsize = jnp.dtype(logits.dtype).itemsize

    # C-aware row tile: ~target_block_bytes per logits block, multiple of 8.
    if tile_b is None:
        tile_b = max(1, target_block_bytes // max(1, C * itemsize))
    tile_b = int(min(tile_b, B))
    if tile_b < B:
        tile_b = max(8, (tile_b // 8) * 8)
    # TODO(synk): very large C (single row > a few MiB) would also need tiling
    # along the class axis; not needed for this module's small class counts.

    num_tiles = pl.cdiv(B, tile_b)
    P = int(max(1, min(parallel_chunks, num_tiles)))   # leading parallel axis (v7x)
    inner = pl.cdiv(num_tiles, P)

    target2 = target.reshape(B).astype(jnp.int32).reshape(B, 1)
    # Fold mask into the per-row class weight once, wrapper-side.
    wt = jnp.where(mask.reshape(B) != 0,
                   weight.astype(jnp.float32)[target.reshape(B).astype(jnp.int32)],
                   jnp.float32(0.0)).reshape(B, 1)

    def row_map(p, j):
        # Clamp so a (rare) overhanging chunk never produces an out-of-bounds
        # block index; its rows are masked out by the `row < total_rows` guard.
        return (jnp.minimum(p * inner + j, num_tiles - 1), 0)

    kernel = functools.partial(masked_ce_kernel, total_rows=B, inner_steps=inner)

    block_bytes = tile_b * C * itemsize
    cost = pl.CostEstimate(
        flops=6 * B * C + 8 * B,
        transcendentals=B * (C + 1),
        bytes_accessed=B * C * itemsize + B * 8 + 2 * P * 8 * 128 * 4,
    )

    compiler_kwargs = dict(dimension_semantics=("parallel", "arbitrary"))
    vmem_needed = 2 * block_bytes + 4 * tile_b * 8 + 2 * 8 * 128 * 4 + (1 << 20)
    if vmem_needed > (16 << 20):
        compiler_kwargs["vmem_limit_bytes"] = int(min(vmem_needed, 96 << 20))

    loss_parts, wsum_parts = pl.pallas_call(
        kernel,
        out_shape=(jax.ShapeDtypeStruct((P * 8, 128), jnp.float32),
                   jax.ShapeDtypeStruct((P * 8, 128), jnp.float32)),
        grid=(P, inner),
        in_specs=[
            pl.BlockSpec((tile_b, C), row_map),   # logits row tile (pipelined)
            pl.BlockSpec((tile_b, 1), row_map),   # int32 targets
            pl.BlockSpec((tile_b, 1), row_map),   # masked weight[target]
        ],
        out_specs=(pl.BlockSpec((8, 128), lambda p, j: (p, 0)),
                   pl.BlockSpec((8, 128), lambda p, j: (p, 0))),
        scratch_shapes=[pltpu.VMEM((tile_b, 1), jnp.float32),
                        pltpu.VMEM((tile_b, 1), jnp.float32)],
        compiler_params=pltpu.CompilerParams(**compiler_kwargs),
        cost_estimate=cost,
    )(logits, target2, wt)

    loss_sum = jnp.sum(loss_parts.reshape(P, 8, 128)[:, 0, 0])
    w_sum = jnp.sum(wsum_parts.reshape(P, 8, 128)[:, 0, 0])
    if reduction == "mean":
        return loss_sum / w_sum
    if reduction == "sum":
        return loss_sum
    # TODO(synk): reduction='none' (per-selected-sample vector) needs a dynamic
    # output shape like torch.masked_select; only 'mean'/'sum' are implemented.
    raise NotImplementedError(f"reduction={reduction!r} not supported")


if __name__ == "__main__":
    # Small shapes consistent with the module: batch=8 logits over 4 classes.
    B, C = 8, 4
    key = jax.random.PRNGKey(0)
    k1, k2, k3, k4 = jax.random.split(key, 4)

    logits = jax.random.normal(k1, (B, C), dtype=jnp.float32)
    target = jax.random.randint(k2, (B,), 0, C, dtype=jnp.int32)
    mask = jax.random.uniform(k3, (B,)) > 0.3
    mask = mask.at[0].set(True)               # guarantee mask is not all zeros
    weight = jax.random.uniform(k4, (C,), minval=0.5, maxval=1.5, dtype=jnp.float32)

    loss = masked_cross_entropy_loss(logits, target, mask, weight, reduction="mean")
    loss = jax.block_until_ready(loss)
    assert loss.shape == () and loss.dtype == jnp.float32

    # Pure-JAX reference (same math as F.cross_entropy with weight over masked
    # rows; 'mean' divides by the sum of the selected class weights).
    lse = jax.scipy.special.logsumexp(logits, axis=-1)
    x_t = jnp.take_along_axis(logits, target[:, None], axis=1)[:, 0]
    w_t = weight[target]
    per = (lse - x_t) * w_t
    ref = (jnp.sum(jnp.where(mask, per, 0.0)) /
           jnp.sum(jnp.where(mask, w_t, 0.0)))
    assert jnp.allclose(loss, ref, atol=1e-5, rtol=1e-5), (float(loss), float(ref))

    # Also check 'sum' reduction path.
    loss_sum = jax.block_until_ready(
        masked_cross_entropy_loss(logits, target, mask, weight, reduction="sum"))
    ref_sum = jnp.sum(jnp.where(mask, per, 0.0))
    assert jnp.allclose(loss_sum, ref_sum, atol=1e-5, rtol=1e-5)

    print("KERNEL_OK")
</pallas_src>

<mosaic_0001>
module attributes {stable_mosaic.version = 11 : i64} {
  func.func @masked_ce_kernel(%arg0: i32, %arg1: i32, %arg2: memref<8x4xf32, #tpu.memory_space<vmem>>, %arg3: memref<8x1xi32, #tpu.memory_space<vmem>>, %arg4: memref<8x1xf32, #tpu.memory_space<vmem>>, %arg5: memref<8x128xf32, #tpu.memory_space<vmem>>, %arg6: memref<8x128xf32, #tpu.memory_space<vmem>>, %arg7: memref<8x1xf32, #tpu.memory_space<vmem>>, %arg8: memref<8x1xf32, #tpu.memory_space<vmem>>) attributes {dimension_semantics = [#tpu.dimension_semantics<parallel>, #tpu.dimension_semantics<arbitrary>], iteration_bounds = array<i64: 1, 1>, scalar_prefetch = 0 : i64, scratch_operands = 2 : i64, tpu.core_type = #tpu.core_type<tc>, window_params = [{transform_indices = @transform_0, window_bounds = array<i64: 8, 4>}, {transform_indices = @transform_1, window_bounds = array<i64: 8, 1>}, {transform_indices = @transform_2, window_bounds = array<i64: 8, 1>}, {transform_indices = @transform_3, window_bounds = array<i64: 8, 128>}, {transform_indices = @transform_4, window_bounds = array<i64: 8, 128>}]} {
    %c1_i32 = arith.constant 1 : i32
    %0 = arith.muli %arg0, %c1_i32 : i32
    %1 = arith.addi %0, %arg1 : i32
    %c0_i32 = arith.constant 0 : i32
    %2 = arith.cmpi eq, %arg1, %c0_i32 : i32
    %3 = arith.extui %2 : i1 to i32
    %c0_i32_0 = arith.constant 0 : i32
    %4 = arith.cmpi ne, %3, %c0_i32_0 : i32
    scf.if %4 {
      %cst_22 = arith.constant 0.000000e+00 : f32
      %45 = vector.broadcast %cst_22 : f32 to vector<8x1xf32>
      %c0_23 = arith.constant 0 : index
      %c0_24 = arith.constant 0 : index
      %46 = vector.load %arg7[%c0_23, %c0_24] : memref<8x1xf32, #tpu.memory_space<vmem>>, vector<8x1xf32>
      tpu.vector_store %arg7[%c0_23, %c0_24], %45 {strides = array<i32>} : memref<8x1xf32, #tpu.memory_space<vmem>>, vector<8x1xf32>,
      %cst_25 = arith.constant 0.000000e+00 : f32
      %47 = vector.broadcast %cst_25 : f32 to vector<8x1xf32>
      %c0_26 = arith.constant 0 : index
      %c0_27 = arith.constant 0 : index
      %48 = vector.load %arg8[%c0_26, %c0_27] : memref<8x1xf32, #tpu.memory_space<vmem>>, vector<8x1xf32>
      tpu.vector_store %arg8[%c0_26, %c0_27], %47 {strides = array<i32>} : memref<8x1xf32, #tpu.memory_space<vmem>>, vector<8x1xf32>,
      %cst_28 = arith.constant 0.000000e+00 : f32
      %49 = vector.broadcast %cst_28 : f32 to vector<8x128xf32>
      %c0_29 = arith.constant 0 : index
      %c0_30 = arith.constant 0 : index
      %50 = vector.load %arg5[%c0_29, %c0_30] : memref<8x128xf32, #tpu.memory_space<vmem>>, vector<8x128xf32>
      tpu.vector_store %arg5[%c0_29, %c0_30], %49 {strides = array<i32>} : memref<8x128xf32, #tpu.memory_space<vmem>>, vector<8x128xf32>,
      %cst_31 = arith.constant 0.000000e+00 : f32
      %51 = vector.broadcast %cst_31 : f32 to vector<8x128xf32>
      %c0_32 = arith.constant 0 : index
      %c0_33 = arith.constant 0 : index
      %52 = vector.load %arg6[%c0_32, %c0_33] : memref<8x128xf32, #tpu.memory_space<vmem>>, vector<8x128xf32>
      tpu.vector_store %arg6[%c0_32, %c0_33], %51 {strides = array<i32>} : memref<8x128xf32, #tpu.memory_space<vmem>>, vector<8x128xf32>,
    } else {
    }
    %c0 = arith.constant 0 : index
    %c0_1 = arith.constant 0 : index
    %5 = vector.load %arg2[%c0, %c0_1] : memref<8x4xf32, #tpu.memory_space<vmem>>, vector<8x4xf32>
    %c0_2 = arith.constant 0 : index
    %c0_3 = arith.constant 0 : index
    %6 = vector.load %arg3[%c0_2, %c0_3] : memref<8x1xi32, #tpu.memory_space<vmem>>, vector<8x1xi32>
    %c0_4 = arith.constant 0 : index
    %c0_5 = arith.constant 0 : index
    %7 = vector.load %arg4[%c0_4, %c0_5] : memref<8x1xf32, #tpu.memory_space<vmem>>, vector<8x1xf32>
    %8 = tpu.iota {dimensions = array<i32: 0>} : vector<8x1xi32>
    %c8_i32 = arith.constant 8 : i32
    %9 = arith.muli %1, %c8_i32 : i32
    %10 = vector.broadcast %9 : i32 to vector<8x1xi32>
    %11 = arith.addi %8, %10 : vector<8x1xi32>
    %c8_i32_6 = arith.constant 8 : i32
    %12 = vector.broadcast %c8_i32_6 : i32 to vector<8x1xi32>
    %13 = arith.cmpi slt, %11, %12 : vector<8x1xi32>
    %14 = tpu.iota {dimensions = array<i32: 1>} : vector<8x4xi32>
    %15 = vector.broadcast %6 : vector<8x1xi32> to vector<8x4xi32>
    %16 = arith.cmpi eq, %14, %15 : vector<8x4xi32>
    %cst = arith.constant 0.000000e+00 : f32
    %17 = vector.broadcast %cst : f32 to vector<8x4xf32>
    %18 = arith.select %16, %5, %17 : vector<8x4xi1>, vector<8x4xf32>
    %cst_7 = arith.constant dense<0.000000e+00> : vector<8xf32>
    %19 = vector.multi_reduction <add>, %18, %cst_7 [1] : vector<8x4xf32> to vector<8xf32>
    %20 = vector.shape_cast %19 : vector<8xf32> to vector<8x1xf32>
    %cst_8 = arith.constant dense<0xFF800000> : vector<8xf32>
    %21 = vector.multi_reduction <maximumf>, %5, %cst_8 [1] : vector<8x4xf32> to vector<8xf32>
    %22 = vector.shape_cast %21 : vector<8xf32> to vector<8x1xf32>
    %23 = vector.broadcast %22 : vector<8x1xf32> to vector<8x4xf32>
    %24 = arith.subf %5, %23 : vector<8x4xf32>
    %25 = math.exp %24 : vector<8x4xf32>
    %cst_9 = arith.constant dense<0.000000e+00> : vector<8xf32>
    %26 = vector.multi_reduction <add>, %25, %cst_9 [1] : vector<8x4xf32> to vector<8xf32>
    %27 = vector.shape_cast %26 : vector<8xf32> to vector<8x1xf32>
    %28 = math.log %27 : vector<8x1xf32>
    %29 = arith.addf %22, %28 : vector<8x1xf32>
    %c0_10 = arith.constant 0 : index
    %c0_11 = arith.constant 0 : index
    %30 = vector.load %arg7[%c0_10, %c0_11] : memref<8x1xf32, #tpu.memory_space<vmem>>, vector<8x1xf32>
    %31 = arith.subf %29, %20 : vector<8x1xf32>
    %32 = arith.mulf %31, %7 : vector<8x1xf32>
    %cst_12 = arith.constant 0.000000e+00 : f32
    %33 = vector.broadcast %cst_12 : f32 to vector<8x1xf32>
    %34 = arith.select %13, %32, %33 : vector<8x1xi1>, vector<8x1xf32>
    %35 = arith.addf %30, %34 : vector<8x1xf32>
    %c0_13 = arith.constant 0 : index
    %c0_14 = arith.constant 0 : index
    %36 = vector.load %arg7[%c0_13, %c0_14] : memref<8x1xf32, #tpu.memory_space<vmem>>, vector<8x1xf32>
    tpu.vector_store %arg7[%c0_13, %c0_14], %35 {strides = array<i32>} : memref<8x1xf32, #tpu.memory_space<vmem>>, vector<8x1xf32>,
    %c0_15 = arith.constant 0 : index
    %c0_16 = arith.constant 0 : index
    %37 = vector.load %arg8[%c0_15, %c0_16] : memref<8x1xf32, #tpu.memory_space<vmem>>, vector<8x1xf32>
    %cst_17 = arith.constant 0.000000e+00 : f32
    %38 = vector.broadcast %cst_17 : f32 to vector<8x1xf32>
    %39 = arith.select %13, %7, %38 : vector<8x1xi1>, vector<8x1xf32>
    %40 = arith.addf %37, %39 : vector<8x1xf32>
    %c0_18 = arith.constant 0 : index
    %c0_19 = arith.constant 0 : index
    %41 = vector.load %arg8[%c0_18, %c0_19] : memref<8x1xf32, #tpu.memory_space<vmem>>, vector<8x1xf32>
    tpu.vector_store %arg8[%c0_18, %c0_19], %40 {strides = array<i32>} : memref<8x1xf32, #tpu.memory_space<vmem>>, vector<8x1xf32>,
    %c0_i32_20 = arith.constant 0 : i32
    %42 = arith.cmpi eq, %arg1, %c0_i32_20 : i32
    %43 = arith.extui %42 : i1 to i32
    %c0_i32_21 = arith.constant 0 : i32
    %44 = arith.cmpi ne, %43, %c0_i32_21 : i32
    scf.if %44 {
      %c0_22 = arith.constant 0 : index
      %c0_23 = arith.constant 0 : index
      %45 = vector.load %arg7[%c0_22, %c0_23] : memref<8x1xf32, #tpu.memory_space<vmem>>, vector<8x1xf32>
      %46 = vector.shape_cast %45 : vector<8x1xf32> to vector<1x8x1xf32>
      %cst_24 = arith.constant dense<0.000000e+00> : vector<1xf32>
      %47 = vector.multi_reduction <add>, %46, %cst_24 [1, 2] : vector<1x8x1xf32> to vector<1xf32>
      %48 = vector.shape_cast %47 : vector<1xf32> to vector<1x1x1xf32>
      %49 = vector.extract %48[0, 0, 0] : f32 from vector<1x1x1xf32>
      %50 = vector.broadcast %49 : f32 to vector<8x128xf32>
      %c0_25 = arith.constant 0 : index
      %c0_26 = arith.constant 0 : index
      %51 = vector.load %arg5[%c0_25, %c0_26] : memref<8x128xf32, #tpu.memory_space<vmem>>, vector<8x128xf32>
      tpu.vector_store %arg5[%c0_25, %c0_26], %50 {strides = array<i32>} : memref<8x128xf32, #tpu.memory_space<vmem>>, vector<8x128xf32>,
      %c0_27 = arith.constant 0 : index
      %c0_28 = arith.constant 0 : index
      %52 = vector.load %arg8[%c0_27, %c0_28] : memref<8x1xf32, #tpu.memory_space<vmem>>, vector<8x1xf32>
      %53 = vector.shape_cast %52 : vector<8x1xf32> to vector<1x8x1xf32>
      %cst_29 = arith.constant dense<0.000000e+00> : vector<1xf32>
      %54 = vector.multi_reduction <add>, %53, %cst_29 [1, 2] : vector<1x8x1xf32> to vector<1xf32>
      %55 = vector.shape_cast %54 : vector<1xf32> to vector<1x1x1xf32>
      %56 = vector.extract %55[0, 0, 0] : f32 from vector<1x1x1xf32>
      %57 = vector.broadcast %56 : f32 to vector<8x128xf32>
      %c0_30 = arith.constant 0 : index
      %c0_31 = arith.constant 0 : index
      %58 = vector.load %arg6[%c0_30, %c0_31] : memref<8x128xf32, #tpu.memory_space<vmem>>, vector<8x128xf32>
      tpu.vector_store %arg6[%c0_30, %c0_31], %57 {strides = array<i32>} : memref<8x128xf32, #tpu.memory_space<vmem>>, vector<8x128xf32>,
    } else {
    }
    return
  }
  func.func @transform_0(%arg0: i32, %arg1: i32) -> (i32, i32) {
    %c1_i32 = arith.constant 1 : i32
    %0 = arith.muli %arg0, %c1_i32 : i32
    %1 = arith.addi %0, %arg1 : i32
    %c0_i32 = arith.constant 0 : i32
    %2 = arith.minsi %1, %c0_i32 : i32
    %c0_i32_0 = arith.constant 0 : i32
    %c0_i32_1 = arith.constant 0 : i32
    return %2, %c0_i32_0 : i32, i32
  }
  func.func @transform_1(%arg0: i32, %arg1: i32) -> (i32, i32) {
    %c1_i32 = arith.constant 1 : i32
    %0 = arith.muli %arg0, %c1_i32 : i32
    %1 = arith.addi %0, %arg1 : i32
    %c0_i32 = arith.constant 0 : i32
    %2 = arith.minsi %1, %c0_i32 : i32
    %c0_i32_0 = arith.constant 0 : i32
    %c0_i32_1 = arith.constant 0 : i32
    return %2, %c0_i32_0 : i32, i32
  }
  func.func @transform_2(%arg0: i32, %arg1: i32) -> (i32, i32) {
    %c1_i32 = arith.constant 1 : i32
    %0 = arith.muli %arg0, %c1_i32 : i32
    %1 = arith.addi %0, %arg1 : i32
    %c0_i32 = arith.constant 0 : i32
    %2 = arith.minsi %1, %c0_i32 : i32
    %c0_i32_0 = arith.constant 0 : i32
    %c0_i32_1 = arith.constant 0 : i32
    return %2, %c0_i32_0 : i32, i32
  }
  func.func @transform_3(%arg0: i32, %arg1: i32) -> (i32, i32) {
    %c0_i32 = arith.constant 0 : i32
    %c0_i32_0 = arith.constant 0 : i32
    return %arg0, %c0_i32 : i32, i32
  }
  func.func @transform_4(%arg0: i32, %arg1: i32) -> (i32, i32) {
    %c0_i32 = arith.constant 0 : i32
    %c0_i32_0 = arith.constant 0 : i32
    return %arg0, %c0_i32 : i32, i32
  }
}

</mosaic_0001>

<bundles_post_ra>
// kernel: tpu_custom_call.1
= control target key start
LH: loop header
LB: loop body
LE: loop exit
PB: predicated region body
PF: predicated region fallthrough
CT: control target
= control target key end

     0   :  { %10 = vsyncpa [#allocation5], 0  ;;  %vm125_vm0 = vcmask 31744   ;;  %s349_s0 = inlined_call_operand.vmem [shape: f32[8,4], index: 0, kind: input, shape index: {}]   ;;  %s350_s1 = inlined_call_operand.vmem [shape: s32[8,1], index: 1, kind: input, shape index: {}]   ;;  %s351_s2 = inlined_call_operand.vmem [shape: f32[8,1], index: 2, kind: input, shape index: {}]   ;;  %s352_s3 = inlined_call_operand.hbm [shape: f32[8,128], index: 3, kind: output, shape index: {0}]   ;;  %s353_s4 = inlined_call_operand.hbm [shape: f32[8,128], index: 4, kind: output, shape index: {1}]  }
   0x1   :  { %v109_v0 = vld [vmem:[%s349_s0] sm:$0xff] }
   0x2   :  { %11 = vsyncpa [#allocation7], 0  ;;  %v129_v1 = vsel %vm125_vm0, %v109_v0, -inf  ;;  %v296_v2 = vmov 0   ;;  %v110_v3 = vld [vmem:[%s350_s1] sm:$0xff]  ;;  %v118_v9 = vlaneseq  ;;  %vm104_vm2 = vcmask 7168  }
   0x3   :  { %239 = vset.pattern.permute.xlu0 %v296_v2  ;;  %v297_v14 = vmov 0.0   ;;  %v111_v15 = vld [vmem:[%s351_s2] sm:$0xff]  ;;  %s298_s2 = smov [#allocation4]   ;;  %s188_s22 = sshll.u32 %s352_s3, 4  ;;  %s189_s22 = int_to_ptr.hbm [resolvable:$true] %s188_s22 }
   0x4   :  { %130 = vmax.xlane.f32.xlu0 %v129_v1  ;;  %v119_v10 = vand.u32 127, %v118_v9  ;;  %105 = vst.msk [vmem:[#allocation2] sm:$0xff] %vm104_vm2, %v297_v14  ;;  %s186_s19 = sshll.u32 %s298_s2, 4  ;;  %s299_s24 = smov [#allocation6]   ;;  %s187_s19 = int_to_ptr.vmem [resolvable:$true] %s186_s19 }
   0x5   :  { %106 = vst.msk [vmem:[#allocation3] sm:$0xff] %vm104_vm2, %v297_v14  ;;  %s197_s25 = sshll.u32 %s299_s24, 4  ;;  %s199_s28 = sshll.u32 %s353_s4, 4  ;;  %s198_s25 = int_to_ptr.vmem [resolvable:$true] %s197_s25  ;;  %s200_s28 = int_to_ptr.hbm [resolvable:$true] %s199_s28 }
   0xb   :  { %v141_v24 = vld [vmem:[#allocation2] sm:$0xff] }
   0xc   :  { %v148_v16 = vld [vmem:[#allocation3] sm:$0xff] }
   0xd   :  { %v150_v17 = vadd.f32 %v148_v16, %v111_v15 }
   0xf   :  { %151 = vst.msk [vmem:[#allocation3] sm:$0xff] %vm104_vm2, %v150_v17 }
  0x16   :  { %v168_v29 = vld [vmem:[#allocation3] sm:$0xff] }
  0x17   :  { %v169_v30 = vsel %vm104_vm2, %v168_v29, 0.0 }
  0x18   :  { %121 = vperm.xlu0 %239, %v110_v3  }
  0x77   :  { %v131_v4 = vpop.xlane.xlu0 %130 }
  0x78   :  { %v132_v5 = vsub.f32 %v109_v0, %v131_v4 }
  0x7a   :  { %v133_v6 = vmul.f32 1.442695, %v132_v5 }
  0x7c   :  { %240 = vpow2.f32 %v133_v6 }
  0x82   :  { %v241_v7 = vpop.eup %240 }
  0x83   :  { %v135_v8 = vsel %vm125_vm0, %v241_v7, 0.0 }
  0x84   :  { %136 = vadd.xlane.f32.xlu1 %v135_v8 }
  0x8a   :  { %v122_v11 = vpop.permute.xlu0 %121 }
  0x8b   :  { %vm123_vm1 = vcmp.eq.s32.totalorder %v119_v10, %v122_v11 }
  0x8c   :  { %v124_v12 = vsel %vm123_vm1, %v109_v0, 0.0 }
  0x8d   :  { %v126_v13 = vsel %vm125_vm0, %v124_v12, 0.0 }
  0x8e   :  { %127 = vadd.xlane.f32.xlu1 %v126_v13 }
  0xf7   :  { %v137_v18 = vpop.xlane.xlu1 %136 }
  0xf8   :  { %242 = vlog2.f32 %v137_v18 }
  0xfe   :  { %v243_v19 = vpop.eup %242 }
  0xff   :  { %v139_v20 = vmul.f32 0.6931472, %v243_v19 }
 0x101   :  { %v140_v21 = vadd.f32 %v139_v20, %v131_v4  ;;  %v128_v22 = vpop.xlane.xlu1 %127 }
 0x103   :  { %v142_v23 = vsub.f32 %v140_v21, %v128_v22 }
 0x105   :  { %v143_v25 = vmul.f32 %v142_v23, %v111_v15 }
 0x107   :  { %v145_v26 = vadd.f32 %v143_v25, %v141_v24 }
 0x109   :  { %147 = vst.msk [vmem:[#allocation2] sm:$0xff] %vm104_vm2, %v145_v26 }
 0x110   :  { %v155_v27 = vld [vmem:[#allocation2] sm:$0xff] }
 0x111   :  { %v156_v28 = vsel %vm104_vm2, %v155_v27, 0.0 }
 0x112   :  { %157 = vadd.xlane.f32.xlu2 %v156_v28 }
 0x11a   :  { %170 = vadd.xlane.f32.xlu2 %v169_v30 }
 0x185   :  { %v158_v31 = vpop.xlane.xlu2 %157 }
 0x186   :  { %v159_v32 = vrot.slane %v158_v31, 4 }
 0x188   :  { %v160_v33 = vadd.f32 %v159_v32, %v158_v31 }
 0x18a   :  { %v161_v34 = vrot.slane %v160_v33, 2 }
 0x18c   :  { %v162_v35 = vadd.f32 %v161_v34, %v160_v33 }
 0x18d   :  { %v171_v36 = vpop.xlane.xlu2 %170 }
 0x18e   :  { %v172_v37 = vrot.slane %v171_v36, 4  ;;  %v163_v38 = vrot.slane %v162_v35, 1 }
 0x190   :  { %v173_v39 = vadd.f32 %v172_v37, %v171_v36  ;;  %v164_v40 = vadd.f32 %v163_v38, %v162_v35 }
 0x192   :  { %v174_v41 = vrot.slane %v173_v39, 2  ;;  %231 = vpush %v164_v40 }
 0x194   :  { %v175_v42 = vadd.f32 %v174_v41, %v173_v39 }
 0x196   :  { %v176_v43 = vrot.slane %v175_v42, 1 }
 0x198   :  { %v177_v44 = vadd.f32 %v176_v43, %v175_v42 }
 0x19a   :  { %233 = vpush %v177_v44 }
 0x1c3   :  { %s232_s23 = spop %231 }
 0x1c4   :  { %v166_v45 = vstv %s232_s23 }
 0x1c5   :  { %167 = vst [vmem:[#allocation4] sm:$0xff] %v166_v45 }
 0x1c6   :  { %191 = dma.vmem_to_hbm [thread:$0]  %s187_s19, 128, %s189_s22, [#allocation5]  }
 0x1cb   :  { %s234_s29 = spop %233 }
 0x1cc   :  { %v179_v46 = vstv %s234_s29 }
 0x1cd   :  { %180 = vst [vmem:[#allocation6] sm:$0xff] %v179_v46 }
 0x1ce   :  { %202 = dma.vmem_to_hbm [thread:$0]  %s198_s25, 128, %s200_s28, [#allocation7]  }
 0x1cf   :  { %292 = dma.done.wait [#allocation5], 128  }
 0x1d0   :  { %293 = vsyncadd [#allocation5], 4294967168 }
 0x1d1   :  { %294 = dma.done.wait [#allocation7], 128  }
 0x1d2   :  { %295 = vsyncadd [#allocation7], 4294967168 }
 0x1d3   :  { %211 = vsyncpa [#allocation5], 1 }
 0x1d4   :  { %212 = vsyncpa [#allocation7], 1 }

</bundles_post_ra>
